<compile_context>
chip_gen: v7x
topology: tpu7x:2x2x1
jax: 0.10.0
libtpu: 0.0.40
codegen_flags: <defaults>
</compile_context>

<pallas_src>
import functools

import jax
import jax.numpy as jnp
from jax.experimental import pallas as pl
from jax.experimental.pallas import tpu as pltpu

LANE = 128
SUB = 8
VREG = SUB * LANE            # 1024 elements = one (8,128) f32 vreg tile
CHUNK_ROWS = 512             # inner fold chunk: 512x128 f32 = 256 KiB / stat

# stats each loss variant needs (static specialization of the kernel)
_STAT_SETS = {
    "bce":      ("bce",),
    "dice":     ("sig", "inter", "tsum"),
    "focal":    ("focal",),
    "combined": ("bce", "sig", "inter", "tsum"),
    "l1":       ("l1",),
}


def _block_geometry():
    """Generation-aware (max_block_rows, vmem_limit_bytes)."""
    try:
        vmem = int(pltpu.get_tpu_info().vmem_capacity_bytes)
    except Exception:
        vmem = 64 * 1024 * 1024
    if vmem >= 100 * 1024 * 1024:
        # v5e/v6e (128 MiB VMEM): 16384x128 f32 = 8 MiB/input/buffer,
        # ~36 MiB total with double buffering -> raise the scoped limit.
        return 16384, 64 * 1024 * 1024
    # v7x-class (64 MiB VMEM): 4 MiB/input/buffer, fits the 32 MiB scoped default.
    return 8192, 32 * 1024 * 1024


def _elementwise_stats(x, t, *, stat_names, gamma, binary_targets,
                       approx_sigmoid):
    """Per-element stats (f32), computing only what `stat_names` asks for."""
    need_bce = ("bce" in stat_names) or ("focal" in stat_names)
    need_sig = (("sig" in stat_names) or ("inter" in stat_names)
                or ("focal" in stat_names and binary_targets))

    e = None
    if need_bce or need_sig:
        e = jnp.exp(-jnp.abs(x))                   # EUP; shared below

    bce = None
    if need_bce:
        # numerically-stable BCEWithLogits (same formula torch uses)
        bce = jnp.maximum(x, 0.0) - x * t + jnp.log1p(e)

    sig = None
    if need_sig:
        num = jnp.where(x >= 0, 1.0, e)
        den = 1.0 + e
        if approx_sigmoid:
            sig = num * pl.reciprocal(den, approx=True)   # EUP vrcp, ~free slot
        else:
            sig = num / den                               # exact (default)

    out = {}
    if "bce" in stat_names:
        out["bce"] = bce
    if "focal" in stat_names:
        if binary_targets:
            # exact for t in {0,1}: 1-pt = 1 - (t*sig + (1-t)*(1-sig))
            one_m_pt = t + sig - 2.0 * t * sig
        else:
            one_m_pt = 1.0 - jnp.exp(-bce)                # EUP
        g = float(gamma)
        if g == int(g) and 0 <= int(g) <= 16:
            gi = int(g)
            if gi == 0:
                pw = jnp.ones_like(one_m_pt)
            else:
                pw = one_m_pt
                for _ in range(gi - 1):                   # integer gamma: VPU muls
                    pw = pw * one_m_pt
        else:
            # non-integer gamma: exp/log path (slower; 0**gamma = 0 is fine)
            pw = jnp.power(one_m_pt, jnp.float32(g))
        out["focal"] = pw * bce
    if "sig" in stat_names:
        out["sig"] = sig
    if "inter" in stat_names:
        out["inter"] = sig * t
    if "tsum" in stat_names:
        out["tsum"] = t
    if "l1" in stat_names:
        out["l1"] = jnp.abs(x - t)
    return [out[nm] for nm in stat_names]


def _loss_stats_kernel(x_ref, t_ref, out_ref, *, stat_names, gamma, block_rows,
                       blocks_per_slice, nblocks_total, total_n, needs_mask,
                       has_phantom, binary_targets, approx_sigmoid):
    """Accumulate per-stat partial sums into a (nstats, 8, 128) VMEM block.

    x_ref, t_ref : VMEM (block_rows, 128) logits / targets
    out_ref      : VMEM (nstats, 8, 128) f32 running sums (resident across the
                   'arbitrary' grid axis; one block per parallel slice)
    """
    p = pl.program_id(0)
    i = pl.program_id(1)

    @pl.when(i == 0)
    def _init():
        out_ref[...] = jnp.zeros_like(out_ref)

    blk = p * blocks_per_slice + i
    nstats = len(stat_names)

    # static chunk geometry (block_rows and CHUNK_ROWS are multiples of 8)
    chunk = block_rows if block_rows <= CHUNK_ROWS else CHUNK_ROWS
    nfull = block_rows // chunk
    rem = block_rows - nfull * chunk

    def chunk_sums(row0, nrows, masked):
        if isinstance(row0, int) and row0 == 0 and nrows == block_rows:
            x = x_ref[...]
            t = t_ref[...]
        else:
            x = x_ref[pl.ds(row0, nrows), :]
            t = t_ref[pl.ds(row0, nrows), :]
        x = x.astype(jnp.float32)
        t = t.astype(jnp.float32)
        stats = _elementwise_stats(
            x, t, stat_names=stat_names, gamma=gamma,
            binary_targets=binary_targets, approx_sigmoid=approx_sigmoid)
        if masked:
            # tail block only: zero out padded / stale elements by their global
            # linear index (select, so stale NaN/Inf cannot leak through).
            row = jax.lax.broadcasted_iota(jnp.int32, (nrows, LANE), 0) + row0
            col = jax.lax.broadcasted_iota(jnp.int32, (nrows, LANE), 1)
            gidx = blk * (block_rows * LANE) + row * LANE + col
            valid = gidx < total_n
            stats = [jnp.where(valid, s, 0.0) for s in stats]
        # tile-aligned (nrows,128)->(nrows/8,8,128) fold: pure VPU adds
        return [s.reshape(nrows // SUB, SUB, LANE).sum(axis=0) for s in stats]

    def fold(masked):
        if nfull == 1 and rem == 0:
            sums = chunk_sums(0, chunk, masked)
        else:
            zero = jnp.zeros((SUB, LANE), jnp.float32)

            def body(c, accs):
                row0 = pl.multiple_of(c * chunk, SUB)
                cs = chunk_sums(row0, chunk, masked)
                return tuple(a + b for a, b in zip(accs, cs))

            sums = list(jax.lax.fori_loop(0, nfull, body, (zero,) * nstats))
            if rem:
                cs = chunk_sums(nfull * chunk, rem, masked)
                sums = [a + b for a, b in zip(sums, cs)]
        for k in range(nstats):
            out_ref[k] += sums[k]

    if has_phantom:
        valid_block = blk < nblocks_total
        if needs_mask:
            is_tail = blk == (nblocks_total - 1)

            @pl.when(jnp.logical_and(valid_block, is_tail))
            def _tail():
                fold(True)

            @pl.when(jnp.logical_and(valid_block, jnp.logical_not(is_tail)))
            def _body():
                fold(False)
        else:
            @pl.when(valid_block)
            def _valid():
                fold(False)
    else:
        if needs_mask:
            is_tail = blk == (nblocks_total - 1)

            @pl.when(is_tail)
            def _tail():
                fold(True)

            @pl.when(jnp.logical_not(is_tail))
            def _body():
                fold(False)
        else:
            fold(False)


def _make_in_map(bpp, nblocks, has_phantom):
    if has_phantom:
        # clamp the (single) phantom block in-bounds; its fold is skipped by
        # pl.when in the kernel, so no double counting either way.
        def index_map(p, i):
            return (jnp.minimum(p * bpp + i, nblocks - 1), 0)
    else:
        def index_map(p, i):
            return (p * bpp + i, 0)
    return index_map


def _compute_stats(pred, target, stat_names, gamma, max_block_rows,
                   binary_targets, approx_sigmoid):
    assert pred.shape == target.shape, "pred/target shapes must match"
    n = int(pred.size)

    xf = jnp.ravel(pred)       # row-major flatten: free (no copy)
    tf = jnp.ravel(target)

    gen_mbr, vmem_limit = _block_geometry()
    if max_block_rows is None:
        mbr = gen_mbr
    else:
        mbr = max(SUB, (int(max_block_rows) // SUB) * SUB)
        mbr = min(mbr, gen_mbr)

    # Pad only when n is not a multiple of one (8,128) tile; the common
    # segmentation case pays zero extra HBM copies.
    # TODO(synk): avoid this full-copy pad for unaligned inputs by passing the
    # flat arrays via memory_space=pl.ANY and DMAing the ragged tail manually.
    padded_n = -(-n // VREG) * VREG
    if padded_n != n:
        xf = jnp.pad(xf, (0, padded_n - n))
        tf = jnp.pad(tf, (0, padded_n - n))

    rows = padded_n // LANE                  # multiple of 8
    br = rows if rows <= mbr else mbr        # block rows
    nblocks = -(-rows // br)
    needs_mask = (padded_n != n) or (rows % br != 0)

    # Always split the block range across two parallel slices when possible
    # (both TCs on v7x; harmless serial loop on v5e/v6e).
    npar = 2 if nblocks >= 2 else 1
    bpp = -(-nblocks // npar)
    has_phantom = (npar * bpp != nblocks)

    x2 = xf.reshape(rows, LANE)
    t2 = tf.reshape(rows, LANE)

    nstats = len(stat_names)
    kernel = functools.partial(
        _loss_stats_kernel,
        stat_names=tuple(stat_names),
        gamma=float(gamma),
        block_rows=br,
        blocks_per_slice=bpp,
        nblocks_total=nblocks,
        total_n=n,
        needs_mask=bool(needs_mask),
        has_phantom=bool(has_phantom),
        binary_targets=bool(binary_targets),
        approx_sigmoid=bool(approx_sigmoid),
    )

    in_map = _make_in_map(bpp, nblocks, has_phantom)
    partials = pl.pallas_call(
        kernel,
        out_shape=jax.ShapeDtypeStruct((npar, nstats, SUB, LANE), jnp.float32),
        grid_spec=pltpu.PrefetchScalarGridSpec(
            num_scalar_prefetch=0,
            grid=(npar, bpp),
            in_specs=[
                pl.BlockSpec((br, LANE), in_map),
                pl.BlockSpec((br, LANE), in_map),
            ],
            out_specs=pl.BlockSpec((None, nstats, SUB, LANE),
                                   lambda p, i: (p, 0, 0, 0)),
        ),
        compiler_params=pltpu.CompilerParams(
            dimension_semantics=("parallel", "arbitrary"),
            vmem_limit_bytes=vmem_limit),
    )(x2, t2)

    # Single cross-lane/sublane reduction on the tiny (npar, nstats, 8, 128) output.
    sums = partials.sum(axis=(0, 2, 3))
    return sums, n


def custom_loss(pred, target, loss_type="bce", alpha=0.8, gamma=2, smooth=1e-6,
                max_block_rows=None, binary_targets=False, approx_sigmoid=False):
    """JAX/Pallas equivalent of customLoss.forward(input, target).

    binary_targets=True uses pt = t*sig + (1-t)*(1-sig) for focal (exact for
    t in {0,1}, one less exp). approx_sigmoid=True uses the EUP approximate
    reciprocal for the sigmoid (slight accuracy loss). Both default to exact.
    """
    if loss_type not in _STAT_SETS:
        raise ValueError(f"Unknown loss_type: {loss_type}")
    names = _STAT_SETS[loss_type]
    sums, n = _compute_stats(pred, target, names, gamma, max_block_rows,
                             binary_targets, approx_sigmoid)
    s = {nm: sums[k] for k, nm in enumerate(names)}
    nf = jnp.float32(n)

    if loss_type == "bce":
        return s["bce"] / nf
    if loss_type == "l1":
        return s["l1"] / nf
    if loss_type == "focal":
        return jnp.float32(alpha) * s["focal"] / nf
    dice = 1.0 - (2.0 * s["inter"] + smooth) / (s["sig"] + s["tsum"] + smooth)
    if loss_type == "dice":
        return dice
    return s["bce"] / nf + dice          # combined


# ------------------------- pure-JAX reference (for checking) ----------------
def _reference_loss(pred, target, loss_type, alpha=0.8, gamma=2, smooth=1e-6):
    x = pred.astype(jnp.float32)
    t = target.astype(jnp.float32)
    bce_el = jnp.maximum(x, 0.0) - x * t + jnp.log1p(jnp.exp(-jnp.abs(x)))
    bce = bce_el.mean()
    sig = jax.nn.sigmoid(x)
    inter = (sig * t).sum()
    dice = 1.0 - (2.0 * inter + smooth) / (sig.sum() + t.sum() + smooth)
    pt = jnp.exp(-bce_el)
    focal = (alpha * (1.0 - pt) ** gamma * bce_el).mean()
    l1 = jnp.abs(x - t).mean()
    return {
        "bce": bce, "dice": dice, "focal": focal,
        "combined": bce + dice, "l1": l1,
    }[loss_type]


if __name__ == "__main__":
    key = jax.random.PRNGKey(0)
    ks = jax.random.split(key, 6)

    def mk(kx, kt, shape):
        x = jax.random.normal(kx, shape, dtype=jnp.float32) * 2.0
        t = (jax.random.uniform(kt, shape) > 0.5).astype(jnp.float32)
        return x, t

    x1, t1 = mk(ks[0], ks[1], (2, 4, 16, 16))   # 2048 elems -> rows=16
    x2, t2 = mk(ks[2], ks[3], (2, 3, 4, 128))   # 3072 elems -> rows=24
    x3, t3 = mk(ks[4], ks[5], (2, 3, 17, 23))   # 2346 elems -> padded/masked

    all_types = ("bce", "dice", "focal", "combined", "l1")
    cases = [
        ("aligned/1-block",           x1, t1, {},                      all_types),
        ("aligned/2-blocks-parallel", x1, t1, {"max_block_rows": 8},   ("bce", "dice", "combined")),
        ("partial-tail-block",        x2, t2, {"max_block_rows": 16},  ("combined", "focal")),
        ("odd-blocks/phantom",        x2, t2, {"max_block_rows": 8},   ("combined", "l1")),
        ("unaligned/padded",          x3, t3, {"max_block_rows": 8},   ("combined", "bce")),
    ]

    ok = True
    for name, x, t, kw, types in cases:
        for lt in types:
            got = jax.block_until_ready(custom_loss(x, t, loss_type=lt, **kw))
            ref = jax.block_until_ready(_reference_loss(x, t, lt))
            if not jnp.allclose(got, ref, rtol=1e-4, atol=1e-6):
                ok = False
                print(f"MISMATCH [{name}] {lt}: pallas={got} ref={ref}")

    # focal with the binary-target pt identity (exact for t in {0,1})
    got = jax.block_until_ready(
        custom_loss(x1, t1, loss_type="focal", binary_targets=True))
    ref = jax.block_until_ready(_reference_loss(x1, t1, "focal"))
    if not jnp.allclose(got, ref, rtol=1e-4, atol=1e-6):
        ok = False
        print(f"MISMATCH [binary_targets] focal: pallas={got} ref={ref}")

    # dice with approximate-reciprocal sigmoid (looser tolerance)
    got = jax.block_until_ready(
        custom_loss(x1, t1, loss_type="dice", approx_sigmoid=True))
    ref = jax.block_until_ready(_reference_loss(x1, t1, "dice"))
    if not jnp.allclose(got, ref, rtol=3e-3, atol=1e-5):
        ok = False
        print(f"MISMATCH [approx_sigmoid] dice: pallas={got} ref={ref}")

    if ok:
        print("KERNEL_OK")
</pallas_src>

<mosaic_0001>
module attributes {stable_mosaic.version = 11 : i64} {
  func.func @_loss_stats_kernel(%arg0: i32, %arg1: i32, %arg2: memref<16x128xf32, #tpu.memory_space<vmem>>, %arg3: memref<16x128xf32, #tpu.memory_space<vmem>>, %arg4: memref<1x1x8x128xf32, #tpu.memory_space<vmem>>) attributes {dimension_semantics = [#tpu.dimension_semantics<parallel>, #tpu.dimension_semantics<arbitrary>], iteration_bounds = array<i64: 1, 1>, scalar_prefetch = 0 : i64, scratch_operands = 0 : i64, tpu.core_type = #tpu.core_type<tc>, window_params = [{transform_indices = @transform_0, window_bounds = array<i64: 16, 128>}, {transform_indices = @transform_1, window_bounds = array<i64: 16, 128>}, {transform_indices = @transform_2, window_bounds = array<i64: 1, 1, 8, 128>}]} {
    %c0_i32 = arith.constant 0 : i32
    %0 = arith.cmpi eq, %arg1, %c0_i32 : i32
    %1 = arith.extui %0 : i1 to i32
    %c0_i32_0 = arith.constant 0 : i32
    %2 = arith.cmpi ne, %1, %c0_i32_0 : i32
    scf.if %2 {
      %cst_14 = arith.constant 0.000000e+00 : f32
      %23 = vector.broadcast %cst_14 : f32 to vector<1x8x128xf32>
      %c0_15 = arith.constant 0 : index
      %c0_16 = arith.constant 0 : index
      %c0_17 = arith.constant 0 : index
      %c0_18 = arith.constant 0 : index
      %24 = vector.load %arg4[%c0_15, %c0_16, %c0_17, %c0_18] : memref<1x1x8x128xf32, #tpu.memory_space<vmem>>, vector<1x1x8x128xf32>
      %25 = vector.shape_cast %24 : vector<1x1x8x128xf32> to vector<1x8x128xf32>
      %26 = vector.shape_cast %23 : vector<1x8x128xf32> to vector<1x1x8x128xf32>
      tpu.vector_store %arg4[%c0_15, %c0_16, %c0_17, %c0_18], %26 {strides = array<i32>} : memref<1x1x8x128xf32, #tpu.memory_space<vmem>>, vector<1x1x8x128xf32>,
    } else {
    }
    %c0 = arith.constant 0 : index
    %c0_1 = arith.constant 0 : index
    %3 = vector.load %arg2[%c0, %c0_1] : memref<16x128xf32, #tpu.memory_space<vmem>>, vector<16x128xf32>
    %c0_2 = arith.constant 0 : index
    %c0_3 = arith.constant 0 : index
    %4 = vector.load %arg3[%c0_2, %c0_3] : memref<16x128xf32, #tpu.memory_space<vmem>>, vector<16x128xf32>
    %5 = math.absf %3 : vector<16x128xf32>
    %cst = arith.constant 0.000000e+00 : f32
    %6 = vector.broadcast %cst : f32 to vector<16x128xf32>
    %7 = arith.subf %6, %5 : vector<16x128xf32>
    %8 = math.exp %7 : vector<16x128xf32>
    %cst_4 = arith.constant 0.000000e+00 : f32
    %9 = vector.broadcast %cst_4 : f32 to vector<16x128xf32>
    %10 = arith.maximumf %3, %9 : vector<16x128xf32>
    %11 = arith.mulf %3, %4 : vector<16x128xf32>
    %12 = arith.subf %10, %11 : vector<16x128xf32>
    %13 = math.log1p %8 : vector<16x128xf32>
    %14 = arith.addf %12, %13 : vector<16x128xf32>
    %15 = vector.shape_cast %14 : vector<16x128xf32> to vector<2x8x128xf32>
    %cst_5 = arith.constant dense<0.000000e+00> : vector<8x128xf32>
    %16 = vector.multi_reduction <add>, %15, %cst_5 [0] : vector<2x8x128xf32> to vector<8x128xf32>
    %c0_6 = arith.constant 0 : index
    %c0_7 = arith.constant 0 : index
    %c0_8 = arith.constant 0 : index
    %c0_9 = arith.constant 0 : index
    %17 = vector.load %arg4[%c0_6, %c0_7, %c0_8, %c0_9] : memref<1x1x8x128xf32, #tpu.memory_space<vmem>>, vector<1x1x8x128xf32>
    %18 = vector.shape_cast %17 : vector<1x1x8x128xf32> to vector<8x128xf32>
    %19 = arith.addf %18, %16 : vector<8x128xf32>
    %c0_10 = arith.constant 0 : index
    %c0_11 = arith.constant 0 : index
    %c0_12 = arith.constant 0 : index
    %c0_13 = arith.constant 0 : index
    %20 = vector.load %arg4[%c0_10, %c0_11, %c0_12, %c0_13] : memref<1x1x8x128xf32, #tpu.memory_space<vmem>>, vector<1x1x8x128xf32>
    %21 = vector.shape_cast %20 : vector<1x1x8x128xf32> to vector<8x128xf32>
    %22 = vector.shape_cast %19 : vector<8x128xf32> to vector<1x1x8x128xf32>
    tpu.vector_store %arg4[%c0_10, %c0_11, %c0_12, %c0_13], %22 {strides = array<i32>} : memref<1x1x8x128xf32, #tpu.memory_space<vmem>>, vector<1x1x8x128xf32>,
    return
  }
  func.func @transform_0(%arg0: i32, %arg1: i32) -> (i32, i32) {
    %c1_i32 = arith.constant 1 : i32
    %0 = arith.muli %arg0, %c1_i32 : i32
    %1 = arith.addi %0, %arg1 : i32
    %c0_i32 = arith.constant 0 : i32
    %c0_i32_0 = arith.constant 0 : i32
    return %1, %c0_i32 : i32, i32
  }
  func.func @transform_1(%arg0: i32, %arg1: i32) -> (i32, i32) {
    %c1_i32 = arith.constant 1 : i32
    %0 = arith.muli %arg0, %c1_i32 : i32
    %1 = arith.addi %0, %arg1 : i32
    %c0_i32 = arith.constant 0 : i32
    %c0_i32_0 = arith.constant 0 : i32
    return %1, %c0_i32 : i32, i32
  }
  func.func @transform_2(%arg0: i32, %arg1: i32) -> (i32, i32, i32, i32) {
    %c0_i32 = arith.constant 0 : i32
    %c0_i32_0 = arith.constant 0 : i32
    %c0_i32_1 = arith.constant 0 : i32
    %c0_i32_2 = arith.constant 0 : i32
    return %arg0, %c0_i32, %c0_i32_0, %c0_i32_1 : i32, i32, i32, i32
  }
}

</mosaic_0001>

<bundles_post_ra>
// kernel: tpu_custom_call.1
= control target key start
LH: loop header
LB: loop body
LE: loop exit
PB: predicated region body
PF: predicated region fallthrough
CT: control target
= control target key end

     0   :  { %7 = vsyncpa [#allocation3], 0  ;;  %s257_s0 = inlined_call_operand.hbm [shape: f32[16,128], index: 0, kind: input, shape index: {}]   ;;  %s258_s1 = inlined_call_operand.hbm [shape: f32[16,128], index: 1, kind: input, shape index: {}]   ;;  %s259_s2 = inlined_call_operand.hbm [shape: f32[1,1,8,128], index: 2, kind: output, shape index: {}]  }
   0x1   :  { %8 = vsyncpa [#allocation6], 0 }
   0x2   :  { %9 = vsyncpa [#allocation4], 0  ;;  %s201_s9 = smov [#allocation2]   ;;  %s129_s13 = scalar_lea.hbm %s257_s0, 256 }
   0x3   :  { %s19_s10 = sshll.u32 %s201_s9, 4  ;;  %p130_p0 = scmp.ne.s32.totalorder %s257_s0, %s129_s13  ;;  %s20_s10 = int_to_ptr.vmem [resolvable:$true] %s19_s10 }
   0x4   :  { %p133_p1 = scmp.lt.u32.totalorder %s129_s13, %s257_s0 }
   0x6   :  { %p135_p2 = pnand %p133_p1, %p130_p0 }
   0x8   :  { %138 = shalt.err (!%p135_p2)
}
   0x9   :  { %s139_s18 = scalar_lea.vmem %s20_s10, 256  ;;  %p144_p4 = scmp.lt.s32.totalorder %s20_s10, %s20_s10 }
   0xa   :  { %p140_p3 = scmp.ne.s32.totalorder %s20_s10, %s139_s18  ;;  %p145_p5 = scmp.lt.s32.totalorder %s139_s18, %s139_s18 }
   0xc   :  { %p146_p6 = por %p145_p5, %p144_p4 }
   0xe   :  { %p147_p7 = pnand %p146_p6, %p140_p3 }
  0x10   :  { %150 = shalt.err (!%p147_p7)
}
  0x11   :  { %s202_s19 = smov 128   ;;  %s203_s20 = smov 8  }
  0x12   :  { %25 = dma.hbm_to_vmem [thread:$0]  %s257_s0, 256, %s20_s10, [#allocation3], %s202_s19, %s202_s19, %s203_s20  }
  0x13   :  { %s204_s23 = smov [#allocation5]   ;;  %s151_s27 = scalar_lea.hbm %s258_s1, 256 }
  0x14   :  { %s35_s24 = sshll.u32 %s204_s23, 4  ;;  %p152_p8 = scmp.ne.s32.totalorder %s258_s1, %s151_s27  ;;  %s36_s24 = int_to_ptr.vmem [resolvable:$true] %s35_s24 }
  0x15   :  { %p155_p9 = scmp.lt.u32.totalorder %s151_s27, %s258_s1 }
  0x17   :  { %p157_p10 = pnand %p155_p9, %p152_p8 }
  0x19   :  { %160 = shalt.err (!%p157_p10)
}
  0x1a   :  { %s161_s4 = scalar_lea.vmem %s36_s24, 256  ;;  %p166_p12 = scmp.lt.s32.totalorder %s36_s24, %s36_s24 }
  0x1b   :  { %p162_p11 = scmp.ne.s32.totalorder %s36_s24, %s161_s4  ;;  %p167_p13 = scmp.lt.s32.totalorder %s161_s4, %s161_s4 }
  0x1d   :  { %p168_p0 = por %p167_p13, %p166_p12 }
  0x1f   :  { %p169_p1 = pnand %p168_p0, %p162_p11 }
  0x21   :  { %172 = shalt.err (!%p169_p1)
}
  0x22   :  { %41 = dma.hbm_to_vmem [thread:$0]  %s258_s1, 256, %s36_s24, [#allocation6], %s202_s19, %s202_s19, %s203_s20  }
  0x23   :  { %195 = dma.done.wait [#allocation3], 256  }
  0x24   :  { %196 = vsyncadd [#allocation3], 4294967040 }
  0x25   :  { %197 = dma.done.wait [#allocation6], 256  }
  0x26   :  { %198 = vsyncadd [#allocation6], 4294967040  ;;  %v57_v0 = vld [vmem:[#allocation2] sm:$0xff]  ;;  %v58_v1 = vld [vmem:[#allocation2 + $0x8] sm:$0xff]  ;;  %s205_s1 = smov [#allocation7]  }
  0x27   :  { %v61_v2 = vand.u32 2147483647, %v57_v0  ;;  %v62_v3 = vand.u32 2147483647, %v58_v1  ;;  %v59_v14 = vld [vmem:[#allocation5] sm:$0xff]  ;;  %v60_v15 = vld [vmem:[#allocation5 + $0x8] sm:$0xff] }
  0x28   :  { %v69_v17 = vmax.f32 %v57_v0, 0.0  ;;  %v71_v18 = vmul.f32 %v59_v14, %v57_v0  ;;  %v70_v21 = vmax.f32 %v58_v1, 0.0  ;;  %v72_v22 = vmul.f32 %v60_v15, %v58_v1  ;;  %s105_s6 = sshll.u32 %s205_s1, 4  ;;  %s106_s6 = int_to_ptr.vmem [resolvable:$true] %s105_s6 }
  0x29   :  { %v63_v4 = vsub.f32 0.0, %v61_v2  ;;  %v64_v5 = vsub.f32 0.0, %v62_v3  ;;  %s173_s7 = scalar_lea.vmem %s106_s6, 128  ;;  %p178_p3 = scmp.lt.s32.totalorder %s106_s6, %s106_s6 }
  0x2a   :  { %v73_v26 = vsub.f32 %v69_v17, %v71_v18  ;;  %v74_v29 = vsub.f32 %v70_v21, %v72_v22  ;;  %p174_p2 = scmp.ne.s32.totalorder %s106_s6, %s173_s7  ;;  %p179_p4 = scmp.lt.s32.totalorder %s173_s7, %s173_s7 }
  0x2b   :  { %v65_v6 = vmul.f32 1.442695, %v63_v4  ;;  %v67_v7 = vmul.f32 1.442695, %v64_v5 }
  0x2c   :  { %p180_p5 = por %p179_p4, %p178_p3 }
  0x2d   :  { %121 = vpow2.f32 %v65_v6 }
  0x2e   :  { %123 = vpow2.f32 %v67_v7  ;;  %p181_p6 = pnand %p180_p5, %p174_p2 }
  0x37   :  { %v122_v8 = vpop.eup %121 }
  0x38   :  { %v124_v9 = vpop.eup %123  ;;  %v75_v10 = vadd.f32 1.0, %v122_v8  ;;  %v78_v12 = vmul.f32 -0.5, %v122_v8  ;;  %v81_v19 = vand.u32 2147483647, %v122_v8 }
  0x39   :  { %v84_v11 = vadd.f32 1.0, %v124_v9  ;;  %v87_v13 = vmul.f32 -0.5, %v124_v9  ;;  %v90_v23 = vand.u32 2147483647, %v124_v9 }
  0x3a   :  { %125 = vlog2.f32 %v75_v10  ;;  %v79_v16 = vadd.f32 1.0, %v78_v12  ;;  %vm82_vm0 = vcmp.lt.f32.partialorder %v81_v19, 0.0004427343 }
  0x3b   :  { %127 = vlog2.f32 %v84_v11  ;;  %v88_v20 = vadd.f32 1.0, %v87_v13  ;;  %vm91_vm1 = vcmp.lt.f32.partialorder %v90_v23, 0.0004427343 }
  0x3c   :  { %v80_v24 = vmul.f32 %v122_v8, %v79_v16 }
  0x3d   :  { %v89_v27 = vmul.f32 %v124_v9, %v88_v20 }
  0x44   :  { %v126_v25 = vpop.eup %125 }
  0x45   :  { %v128_v28 = vpop.eup %127  ;;  %v77_v30 = vmul.f32 0.6931472, %v126_v25 }
  0x46   :  { %v86_v31 = vmul.f32 0.6931472, %v128_v28 }
  0x47   :  { %v83_v32 = vsel %vm82_vm0, %v80_v24, %v77_v30 }
  0x48   :  { %v92_v33 = vsel %vm91_vm1, %v89_v27, %v86_v31  ;;  %v93_v34 = vadd.f32 %v83_v32, %v73_v26 }
  0x49   :  { %v94_v35 = vadd.f32 %v92_v33, %v74_v29 }
  0x4b   :  { %v95_v36 = vadd.f32 %v94_v35, %v93_v34 }
  0x4d   :  { %98 = vst [vmem:[#allocation7] sm:$0xff] %v95_v36 }
  0x4e   :  { %184 = shalt.err (!%p181_p6)
}
  0x4f   :  { %s185_s10 = scalar_lea.hbm %s259_s2, 128 }
  0x50   :  { %p186_p7 = scmp.ne.s32.totalorder %s259_s2, %s185_s10  ;;  %p189_p8 = scmp.lt.u32.totalorder %s185_s10, %s259_s2 }
  0x52   :  { %p191_p9 = pnand %p189_p8, %p186_p7 }
  0x54   :  { %194 = shalt.err (!%p191_p9)
}
  0x55   :  { %108 = dma.vmem_to_hbm [thread:$0]  %s106_s6, 128, %s259_s2, [#allocation4]  }
  0x56   :  { %199 = dma.done.wait [#allocation4], 128  }
  0x57   :  { %200 = vsyncadd [#allocation4], 4294967168 }
  0x58   :  { %112 = vsyncpa [#allocation3], 1 }
  0x59   :  { %113 = vsyncpa [#allocation6], 1 }
  0x5a   :  { %114 = vsyncpa [#allocation4], 1 }

</bundles_post_ra>
